<compile_context>
chip_gen: v7x
topology: tpu7x:2x2x1
jax: 0.10.0
libtpu: 0.0.40
codegen_flags: <defaults>
</compile_context>

<pallas_src>
import jax
import jax.numpy as jnp
from jax.experimental import pallas as pl
from jax.experimental.pallas import tpu as pltpu


def _sigmoid(x):
    # exp and the approximate reciprocal both run on the EUP, keeping VALU
    # slots free for the elementwise gate/blend work.
    return pl.reciprocal(1.0 + jnp.exp(-x), approx=True)


def _mat_gru_kernel(z_ref, h_ref, w_ur_ref, w_h_ref, b_ref, o_ref, rhs_ref):
    """General path (explicit z_topk).

    w_ur_ref : (2R, 2R) = [[Wu, Uu], [Wr, Ur]]   (VMEM-resident)
    w_h_ref  : (R, 2R)  = [Wh, Uh]               (VMEM-resident)
    b_ref    : (3R, TILE_C) = [bu; br; bh]
    rhs_ref  : (2R, TILE_C) VMEM scratch holding the stacked matmul RHS.
    """
    R = h_ref.shape[0]
    z = z_ref[...]
    h = h_ref[...]

    # Stack [z; prev_Q] once -> a single K=2R matmul yields both the update
    # and reset pre-activations (fills the 256-deep MXU when R == 128).
    rhs_ref[0:R, :] = z
    rhs_ref[R:2 * R, :] = h
    pre_ur = jnp.dot(w_ur_ref[...], rhs_ref[...],
                     preferred_element_type=jnp.float32) + b_ref[0:2 * R, :]

    update = _sigmoid(pre_ur[0:R, :])
    reset = _sigmoid(pre_ur[R:2 * R, :])

    # Candidate gate: reuse the scratch — the z half is unchanged, only the
    # hidden half becomes reset * prev_Q.
    rhs_ref[R:2 * R, :] = reset * h
    h_cap = jnp.tanh(
        jnp.dot(w_h_ref[...], rhs_ref[...],
                preferred_element_type=jnp.float32) + b_ref[2 * R:3 * R, :])

    o_ref[...] = ((1.0 - update) * h + update * h_cap).astype(o_ref.dtype)


def _mat_gru_self_kernel(h_ref, w_ur_ref, w_h_ref, b_ref, o_ref, rhs_ref):
    """z_topk is None path: z == prev_Q, so U is pre-folded into W.

    w_ur_ref : (2R, R) = [Wu + Uu; Wr + Ur]   (VMEM-resident)
    """
    R = h_ref.shape[0]
    h = h_ref[...]

    pre_ur = jnp.dot(w_ur_ref[...], h,
                     preferred_element_type=jnp.float32) + b_ref[0:2 * R, :]
    update = _sigmoid(pre_ur[0:R, :])
    reset = _sigmoid(pre_ur[R:2 * R, :])

    rhs_ref[0:R, :] = h
    rhs_ref[R:2 * R, :] = reset * h
    h_cap = jnp.tanh(
        jnp.dot(w_h_ref[...], rhs_ref[...],
                preferred_element_type=jnp.float32) + b_ref[2 * R:3 * R, :])

    o_ref[...] = ((1.0 - update) * h + update * h_cap).astype(o_ref.dtype)


def prepare_mat_gru_params(params):
    """One-time (parameter-build-time) weight/bias fusion; NOT per-call."""
    Wu, Uu = params["Wu"], params["Uu"]
    Wr, Ur = params["Wr"], params["Ur"]
    Wh, Uh = params["Wh"], params["Uh"]
    return {
        # K-fused update/reset weights for the explicit-z path.
        "w_ur": jnp.block([[Wu, Uu], [Wr, Ur]]),               # (2R, 2R)
        # U folded into W for the z_topk=None path (z == prev_Q).
        "w_ur_self": jnp.concatenate([Wu + Uu, Wr + Ur], 0),   # (2R, R)
        # K-fused candidate-gate weights (shared by both paths).
        "w_h": jnp.concatenate([Wh, Uh], 1),                   # (R, 2R)
        "b": jnp.concatenate([params["bu"], params["br"], params["bh"]], 0),
    }


def _pick_tile_c(C, max_tile_c):
    """Largest multiple-of-128 column tile that divides C, else the full C."""
    if C % 128 == 0:
        t = min(C, max(128, (max_tile_c // 128) * 128))
        while C % t:
            t -= 128
        return t
    # Small / ragged C: single (lane-padded) tile.  Correct but not lane-dense;
    # production shapes should keep C a multiple of 128.
    return C


def mat_gru_cell(prev_Q, prepared, z_topk=None, *, max_tile_c=512):
    R, C = prev_Q.shape
    tile_c = _pick_tile_c(C, max_tile_c)
    grid = (C // tile_c,)

    def col_tile(rows):
        return pl.BlockSpec((rows, tile_c), lambda c: (0, c))

    def resident(shape):
        # Constant block index -> fetched once, stays in VMEM across the grid.
        return pl.BlockSpec(shape, lambda c: (0, 0))

    # VMEM budget: resident fused weights (double-buffered) + double-buffered
    # activation/bias/output tiles + stacked-RHS scratch + f32 intermediates.
    vmem_est = (2 * 6 * R * R * 4
                + 2 * 6 * R * tile_c * 4
                + 2 * R * tile_c * 4
                + 8 * R * tile_c * 4)
    compiler_params = pltpu.CompilerParams(
        # Independent column tiles -> megacore-shardable on v7x.
        dimension_semantics=("parallel",),
        vmem_limit_bytes=int(min(100 * 1024 * 1024,
                                 max(32 * 1024 * 1024, 4 * vmem_est))),
    )
    scratch = [pltpu.VMEM((2 * R, tile_c), jnp.float32)]
    out_shape = jax.ShapeDtypeStruct((R, C), prev_Q.dtype)

    if z_topk is None:
        cost = pl.CostEstimate(
            flops=8 * R * R * C,
            transcendentals=5 * R * C,
            bytes_accessed=4 * (R * C + 4 * R * R + 3 * R * C + R * C))
        return pl.pallas_call(
            _mat_gru_self_kernel,
            out_shape=out_shape,
            grid_spec=pltpu.PrefetchScalarGridSpec(
                num_scalar_prefetch=0,
                grid=grid,
                in_specs=[
                    col_tile(R),                 # prev_Q
                    resident((2 * R, R)),        # [Wu+Uu; Wr+Ur]
                    resident((R, 2 * R)),        # [Wh, Uh]
                    col_tile(3 * R),             # [bu; br; bh]
                ],
                out_specs=col_tile(R),
                scratch_shapes=scratch),
            compiler_params=compiler_params,
            cost_estimate=cost,
        )(prev_Q, prepared["w_ur_self"], prepared["w_h"], prepared["b"])

    cost = pl.CostEstimate(
        flops=12 * R * R * C,
        transcendentals=5 * R * C,
        bytes_accessed=4 * (2 * R * C + 6 * R * R + 3 * R * C + R * C))
    return pl.pallas_call(
        _mat_gru_kernel,
        out_shape=out_shape,
        grid_spec=pltpu.PrefetchScalarGridSpec(
            num_scalar_prefetch=0,
            grid=grid,
            in_specs=[
                col_tile(R),                     # z_topk
                col_tile(R),                     # prev_Q
                resident((2 * R, 2 * R)),        # [[Wu, Uu], [Wr, Ur]]
                resident((R, 2 * R)),            # [Wh, Uh]
                col_tile(3 * R),                 # [bu; br; bh]
            ],
            out_specs=col_tile(R),
            scratch_shapes=scratch),
        compiler_params=compiler_params,
        cost_estimate=cost,
    )(z_topk, prev_Q, prepared["w_ur"], prepared["w_h"], prepared["b"])


def reference_mat_gru_cell(prev_Q, params, z_topk=None):
    """Pure-JAX reference mirroring the PyTorch MatGRUCell (f32 HIGHEST)."""
    if z_topk is None:
        z_topk = prev_Q
    hi = jax.lax.Precision.HIGHEST

    def gate(W, U, b, x, hidden, act):
        return act(jnp.dot(W, x, precision=hi)
                   + jnp.dot(U, hidden, precision=hi) + b)

    sig = jax.nn.sigmoid
    update = gate(params["Wu"], params["Uu"], params["bu"], z_topk, prev_Q, sig)
    reset = gate(params["Wr"], params["Ur"], params["br"], z_topk, prev_Q, sig)
    h_cap = reset * prev_Q
    h_cap = gate(params["Wh"], params["Uh"], params["bh"], z_topk, h_cap,
                 jnp.tanh)
    return (1.0 - update) * prev_Q + update * h_cap


def _make_params(key, rows, cols):
    ks = jax.random.split(key, 9)

    def xavier(k, shape):
        bound = jnp.sqrt(6.0 / sum(shape))
        return jax.random.uniform(k, shape, jnp.float32, -bound, bound)

    return {
        "Wu": xavier(ks[0], (rows, rows)),
        "Uu": xavier(ks[1], (rows, rows)),
        "bu": 0.1 * jax.random.normal(ks[2], (rows, cols), jnp.float32),
        "Wr": xavier(ks[3], (rows, rows)),
        "Ur": xavier(ks[4], (rows, rows)),
        "br": 0.1 * jax.random.normal(ks[5], (rows, cols), jnp.float32),
        "Wh": xavier(ks[6], (rows, rows)),
        "Uh": xavier(ks[7], (rows, rows)),
        "bh": 0.1 * jax.random.normal(ks[8], (rows, cols), jnp.float32),
    }


if __name__ == "__main__":
    key = jax.random.PRNGKey(0)
    # (rows, cols, max_tile_c).  The second case exercises the column grid
    # (tile_c=128 -> 2 grid steps) with VMEM-resident fused weights.
    cases = [(16, 32, 512), (64, 256, 128)]
    # Kernel matmuls use the fast default MXU precision (vs the f32
    # Precision.HIGHEST reference) and the sigmoid uses the approximate EUP
    # reciprocal, so allow a few e-3 of slack.
    atol = rtol = 2e-2

    for rows, cols, max_tile_c in cases:
        key, pk, qk, zk = jax.random.split(key, 4)
        params = _make_params(pk, rows, cols)
        prev_Q = jax.random.normal(qk, (rows, cols), jnp.float32)
        z_topk = jax.random.normal(zk, (rows, cols), jnp.float32)
        prepared = prepare_mat_gru_params(params)   # one-time weight fusion

        out1 = jax.block_until_ready(
            mat_gru_cell(prev_Q, prepared, z_topk, max_tile_c=max_tile_c))
        out2 = jax.block_until_ready(
            mat_gru_cell(prev_Q, prepared, None, max_tile_c=max_tile_c))

        ref1 = reference_mat_gru_cell(prev_Q, params, z_topk)
        ref2 = reference_mat_gru_cell(prev_Q, params, None)

        assert out1.shape == (rows, cols) and out2.shape == (rows, cols)
        assert jnp.allclose(out1, ref1, atol=atol, rtol=rtol), (
            f"mismatch (z_topk given) rows={rows} cols={cols} "
            f"max_err={float(jnp.max(jnp.abs(out1 - ref1)))}")
        assert jnp.allclose(out2, ref2, atol=atol, rtol=rtol), (
            f"mismatch (z_topk=None) rows={rows} cols={cols} "
            f"max_err={float(jnp.max(jnp.abs(out2 - ref2)))}")

    print("KERNEL_OK")
</pallas_src>

<mosaic_0001>
module attributes {stable_mosaic.version = 11 : i64} {
  func.func @_mat_gru_kernel(%arg0: i32, %arg1: memref<16x32xf32, #tpu.memory_space<vmem>>, %arg2: memref<16x32xf32, #tpu.memory_space<vmem>>, %arg3: memref<32x32xf32, #tpu.memory_space<vmem>>, %arg4: memref<16x32xf32, #tpu.memory_space<vmem>>, %arg5: memref<48x32xf32, #tpu.memory_space<vmem>>, %arg6: memref<16x32xf32, #tpu.memory_space<vmem>>, %arg7: memref<32x32xf32, #tpu.memory_space<vmem>>) attributes {dimension_semantics = [#tpu.dimension_semantics<parallel>], iteration_bounds = array<i64: 1>, scalar_prefetch = 0 : i64, scratch_operands = 1 : i64, tpu.core_type = #tpu.core_type<tc>, window_params = [{transform_indices = @transform_0, window_bounds = array<i64: 16, 32>}, {transform_indices = @transform_1, window_bounds = array<i64: 16, 32>}, {pipeline_mode = #tpu.pipeline_mode<synchronous>, transform_indices = @transform_2, window_bounds = array<i64: 32, 32>}, {pipeline_mode = #tpu.pipeline_mode<synchronous>, transform_indices = @transform_3, window_bounds = array<i64: 16, 32>}, {transform_indices = @transform_4, window_bounds = array<i64: 48, 32>}, {transform_indices = @transform_5, window_bounds = array<i64: 16, 32>}]} {
    %c0 = arith.constant 0 : index
    %c0_0 = arith.constant 0 : index
    %0 = vector.load %arg1[%c0, %c0_0] : memref<16x32xf32, #tpu.memory_space<vmem>>, vector<16x32xf32>
    %c0_1 = arith.constant 0 : index
    %c0_2 = arith.constant 0 : index
    %1 = vector.load %arg2[%c0_1, %c0_2] : memref<16x32xf32, #tpu.memory_space<vmem>>, vector<16x32xf32>
    %c0_3 = arith.constant 0 : index
    %c0_4 = arith.constant 0 : index
    %2 = vector.load %arg7[%c0_3, %c0_4] : memref<32x32xf32, #tpu.memory_space<vmem>>, vector<16x32xf32>
    tpu.vector_store %arg7[%c0_3, %c0_4], %0 {strides = array<i32>} : memref<32x32xf32, #tpu.memory_space<vmem>>, vector<16x32xf32>,
    %c16 = arith.constant 16 : index
    %c0_5 = arith.constant 0 : index
    %3 = vector.load %arg7[%c16, %c0_5] : memref<32x32xf32, #tpu.memory_space<vmem>>, vector<16x32xf32>
    tpu.vector_store %arg7[%c16, %c0_5], %1 {strides = array<i32>} : memref<32x32xf32, #tpu.memory_space<vmem>>, vector<16x32xf32>,
    %c0_6 = arith.constant 0 : index
    %c0_7 = arith.constant 0 : index
    %4 = vector.load %arg3[%c0_6, %c0_7] : memref<32x32xf32, #tpu.memory_space<vmem>>, vector<32x32xf32>
    %c0_8 = arith.constant 0 : index
    %c0_9 = arith.constant 0 : index
    %5 = vector.load %arg7[%c0_8, %c0_9] : memref<32x32xf32, #tpu.memory_space<vmem>>, vector<32x32xf32>
    %cst = arith.constant dense<0.000000e+00> : vector<32x32xf32>
    %6 = tpu.matmul %4, %5, %cst {dimension_numbers = #tpu.dot_dimension_numbers<[1], [0], [0], [1], [0, 0, 1, 1], [], []>} : vector<32x32xf32>, vector<32x32xf32>, vector<32x32xf32> -> vector<32x32xf32>
    %c0_10 = arith.constant 0 : index
    %c0_11 = arith.constant 0 : index
    %7 = vector.load %arg5[%c0_10, %c0_11] : memref<48x32xf32, #tpu.memory_space<vmem>>, vector<32x32xf32>
    %8 = arith.addf %6, %7 : vector<32x32xf32>
    %9 = vector.extract_strided_slice %8 {offsets = [0, 0], sizes = [16, 32], strides = [1, 1]} : vector<32x32xf32> to vector<16x32xf32>
    %cst_12 = arith.constant 0.000000e+00 : f32
    %10 = vector.broadcast %cst_12 : f32 to vector<16x32xf32>
    %11 = arith.subf %10, %9 : vector<16x32xf32>
    %12 = math.exp %11 : vector<16x32xf32>
    %cst_13 = arith.constant 1.000000e+00 : f32
    %13 = vector.broadcast %cst_13 : f32 to vector<16x32xf32>
    %14 = arith.addf %13, %12 : vector<16x32xf32>
    %15 = tpu.reciprocal %14 {approx = true} : vector<16x32xf32> -> vector<16x32xf32>
    %16 = vector.extract_strided_slice %8 {offsets = [16, 0], sizes = [16, 32], strides = [1, 1]} : vector<32x32xf32> to vector<16x32xf32>
    %cst_14 = arith.constant 0.000000e+00 : f32
    %17 = vector.broadcast %cst_14 : f32 to vector<16x32xf32>
    %18 = arith.subf %17, %16 : vector<16x32xf32>
    %19 = math.exp %18 : vector<16x32xf32>
    %cst_15 = arith.constant 1.000000e+00 : f32
    %20 = vector.broadcast %cst_15 : f32 to vector<16x32xf32>
    %21 = arith.addf %20, %19 : vector<16x32xf32>
    %22 = tpu.reciprocal %21 {approx = true} : vector<16x32xf32> -> vector<16x32xf32>
    %23 = arith.mulf %22, %1 : vector<16x32xf32>
    %c16_16 = arith.constant 16 : index
    %c0_17 = arith.constant 0 : index
    %24 = vector.load %arg7[%c16_16, %c0_17] : memref<32x32xf32, #tpu.memory_space<vmem>>, vector<16x32xf32>
    tpu.vector_store %arg7[%c16_16, %c0_17], %23 {strides = array<i32>} : memref<32x32xf32, #tpu.memory_space<vmem>>, vector<16x32xf32>,
    %c0_18 = arith.constant 0 : index
    %c0_19 = arith.constant 0 : index
    %25 = vector.load %arg4[%c0_18, %c0_19] : memref<16x32xf32, #tpu.memory_space<vmem>>, vector<16x32xf32>
    %c0_20 = arith.constant 0 : index
    %c0_21 = arith.constant 0 : index
    %26 = vector.load %arg7[%c0_20, %c0_21] : memref<32x32xf32, #tpu.memory_space<vmem>>, vector<32x32xf32>
    %cst_22 = arith.constant dense<0.000000e+00> : vector<16x32xf32>
    %27 = tpu.matmul %25, %26, %cst_22 {dimension_numbers = #tpu.dot_dimension_numbers<[1], [0], [0], [1], [0, 0, 1, 1], [], []>} : vector<16x32xf32>, vector<32x32xf32>, vector<16x32xf32> -> vector<16x32xf32>
    %c32 = arith.constant 32 : index
    %c0_23 = arith.constant 0 : index
    %28 = vector.load %arg5[%c32, %c0_23] : memref<48x32xf32, #tpu.memory_space<vmem>>, vector<16x32xf32>
    %29 = arith.addf %27, %28 : vector<16x32xf32>
    %30 = math.tanh %29 : vector<16x32xf32>
    %cst_24 = arith.constant 1.000000e+00 : f32
    %31 = vector.broadcast %cst_24 : f32 to vector<16x32xf32>
    %32 = arith.subf %31, %15 : vector<16x32xf32>
    %33 = arith.mulf %32, %1 : vector<16x32xf32>
    %34 = arith.mulf %15, %30 : vector<16x32xf32>
    %35 = arith.addf %33, %34 : vector<16x32xf32>
    %c0_25 = arith.constant 0 : index
    %c0_26 = arith.constant 0 : index
    %36 = vector.load %arg6[%c0_25, %c0_26] : memref<16x32xf32, #tpu.memory_space<vmem>>, vector<16x32xf32>
    tpu.vector_store %arg6[%c0_25, %c0_26], %35 {strides = array<i32>} : memref<16x32xf32, #tpu.memory_space<vmem>>, vector<16x32xf32>,
    return
  }
  func.func @transform_0(%arg0: i32) -> (i32, i32) {
    %c0_i32 = arith.constant 0 : i32
    %c0_i32_0 = arith.constant 0 : i32
    return %c0_i32, %arg0 : i32, i32
  }
  func.func @transform_1(%arg0: i32) -> (i32, i32) {
    %c0_i32 = arith.constant 0 : i32
    %c0_i32_0 = arith.constant 0 : i32
    return %c0_i32, %arg0 : i32, i32
  }
  func.func @transform_2(%arg0: i32) -> (i32, i32) {
    %c0_i32 = arith.constant 0 : i32
    %c0_i32_0 = arith.constant 0 : i32
    %c0_i32_1 = arith.constant 0 : i32
    return %c0_i32, %c0_i32_0 : i32, i32
  }
  func.func @transform_3(%arg0: i32) -> (i32, i32) {
    %c0_i32 = arith.constant 0 : i32
    %c0_i32_0 = arith.constant 0 : i32
    %c0_i32_1 = arith.constant 0 : i32
    return %c0_i32, %c0_i32_0 : i32, i32
  }
  func.func @transform_4(%arg0: i32) -> (i32, i32) {
    %c0_i32 = arith.constant 0 : i32
    %c0_i32_0 = arith.constant 0 : i32
    return %c0_i32, %arg0 : i32, i32
  }
  func.func @transform_5(%arg0: i32) -> (i32, i32) {
    %c0_i32 = arith.constant 0 : i32
    %c0_i32_0 = arith.constant 0 : i32
    return %c0_i32, %arg0 : i32, i32
  }
}

</mosaic_0001>

<bundles_post_ra>
// kernel: tpu_custom_call.1
= control target key start
LH: loop header
LB: loop body
LE: loop exit
PB: predicated region body
PF: predicated region fallthrough
CT: control target
= control target key end

     0   :  { %vm25_vm0 = vcmask 261120   ;;  %s505_s0 = inlined_call_operand.vmem [shape: f32[16,32], index: 0, kind: input, shape index: {}]   ;;  %s506_s1 = inlined_call_operand.vmem [shape: f32[16,32], index: 1, kind: input, shape index: {}]   ;;  %s507_s2 = inlined_call_operand.vmem [shape: f32[32,32], index: 2, kind: input, shape index: {}]   ;;  %s508_s3 = inlined_call_operand.vmem [shape: f32[16,32], index: 3, kind: input, shape index: {}]   ;;  %s509_s4 = inlined_call_operand.vmem [shape: f32[48,32], index: 4, kind: input, shape index: {}]   ;;  %s510_s5 = inlined_call_operand.hbm [shape: f32[16,32], index: 5, kind: output, shape index: {}]  }
   0x1   :  { %v21_v0 = vld [vmem:[%s505_s0] sm:$0xff]  ;;  %v22_v1 = vld [vmem:[%s505_s0 + $0x8] sm:$0xff] }
   0x2   :  { %v430_v2 = vld [vmem:[%s506_s1] sm:$0xff]  ;;  %26 = vst.msk [vmem:[#allocation2] sm:$0xff] %vm25_vm0, %v21_v0  ;;  %27 = vst.msk [vmem:[#allocation2 + $0x8] sm:$0xff] %vm25_vm0, %v22_v1  ;;  %v437_v3 = vld [vmem:[%s506_s1 + $0x8] sm:$0xff] }
   0x3   :  { %28 = vst.msk [vmem:[#allocation2 + $0x10] sm:$0xff] %vm25_vm0, %v430_v2  ;;  %v30_v4 = vld [vmem:[%s507_s2] sm:$0xff]  ;;  %29 = vst.msk [vmem:[#allocation2 + $0x18] sm:$0xff] %vm25_vm0, %v437_v3 }
   0x4   :  { %308 = vmatprep.mubr.msk.f32.mxu0 %vm25_vm0, %v30_v4 }
   0x5   :  { %10 = vsyncpa [#allocation4], 0  ;;  %v31_v11 = vld [vmem:[%s507_s2 + $0x8] sm:$0xff]  ;;  %v32_v12 = vld [vmem:[%s507_s2 + $0x10] sm:$0xff]  ;;  %s388_s21 = smov [#allocation3]  }
   0x6   :  { %v33_v13 = vld [vmem:[%s507_s2 + $0x18] sm:$0xff]  ;;  %v163_v14 = vld [vmem:[%s508_s3] sm:$0xff]  ;;  %v40_v18 = vld [vmem:[%s509_s4 + $0x10] sm:$0xff]  ;;  %s269_s22 = sshll.u32 %s388_s21, 4  ;;  %s270_s22 = int_to_ptr.vmem [resolvable:$true] %s269_s22 }
   0x7   :  { %322 = vmatprep.mubr.msk.f32.mxu1 %vm25_vm0, %v163_v14  ;;  %v41_v17 = vld [vmem:[%s509_s4 + $0x18] sm:$0xff]  ;;  %v164_v38 = vld [vmem:[%s508_s3 + $0x8] sm:$0xff]  ;;  %v38_v40 = vld [vmem:[%s509_s4] sm:$0xff]  ;;  %p369_p1 = scmp.lt.s32.totalorder %s270_s22, %s270_s22 }
   0x8   :  { %v39_v39 = vld [vmem:[%s509_s4 + $0x8] sm:$0xff]  ;;  %v169_v52 = vld [vmem:[%s509_s4 + $0x20] sm:$0xff] }
   0x9   :  { %v34_v5 = vld [vmem:[#allocation2] sm:$0xff]  ;;  %v35_v6 = vld [vmem:[#allocation2 + $0x8] sm:$0xff] }
   0xa   :  { %v36_v7 = vld [vmem:[#allocation2 + $0x10] sm:$0xff]  ;;  %v325_v8 = vpack.c.bf16 %v35_v6, %v34_v5  ;;  %v37_v9 = vld [vmem:[#allocation2 + $0x18] sm:$0xff]  ;;  %v170_v51 = vld [vmem:[%s509_s4 + $0x28] sm:$0xff]  ;;  %s364_s4 = scalar_lea.vmem %s270_s22, 256 }
   0xb   :  { %v329_v10 = vpack.c.bf16 %v37_v9, %v36_v7  ;;  %p365_p0 = scmp.ne.s32.totalorder %s270_s22, %s364_s4  ;;  %p370_p2 = scmp.lt.s32.totalorder %s364_s4, %s364_s4 }
   0xc   :  { %326 = vmatprep.subr.bf16.mxu0 %v325_v8  ;;  %334 = vmatprep.subr.bf16.mxu1 %v325_v8 }
   0xd   :  { %328 = vmatpush3.bf16.msra.mxu0 %v325_v8  ;;  %336 = vmatpush3.bf16.msra.mxu1 %v325_v8  ;;  %p371_p3 = por %p370_p2, %p369_p1 }
   0xe   :  { %330 = vmatprep.subr.bf16.mxu0 %v329_v10 }
   0xf   :  { %p372_p4 = pnand %p371_p3, %p365_p0 }
  0x11   :  { %332 = vmatpush3.bf16.msra.mxu0 %v329_v10 }
  0x14   :  { %309 = vmatmul.mubr.msk.f32.vlgmr.msra.gmra.mrb[0].mxu0 %vm25_vm0, %v31_v11 }
  0x15   :  { %311 = vmatprep.mubr.msk.f32.mxu0 %vm25_vm0, %v32_v12 }
  0x18   :  { %312 = vmatmul.mubr.msk.f32.gmra.mrb[2].mxu0 %vm25_vm0, %v33_v13 }
  0xe7   :  { %v310_v15 = vpop.f32.mrb[0].mxu0 }
  0xe8   :  { %v120_v16 = vpop.f32.mrb[1].mxu0  ;;  %v126_v41 = vadd.f32 %v310_v15, %v39_v39 }
  0xe9   :  { %v121_v42 = vadd.f32 %v120_v16, %v38_v40 }
  0xea   :  { %v140_v43 = vsub.f32 0.0, %v126_v41 }
  0xeb   :  { %v313_v19 = vpop.f32.mrb[2].mxu0  ;;  %v139_v44 = vsub.f32 0.0, %v121_v42 }
  0xec   :  { %v136_v20 = vadd.f32 %v313_v19, %v41_v17  ;;  %v130_v21 = vpop.f32.mrb[3].mxu0  ;;  %v143_v45 = vmul.f32 1.442695, %v140_v43 }
  0xed   :  { %v131_v22 = vadd.f32 %v130_v21, %v40_v18  ;;  %v141_v46 = vmul.f32 1.442695, %v139_v44 }
  0xee   :  { %v150_v23 = vsub.f32 0.0, %v136_v20 }
  0xef   :  { %v149_v24 = vsub.f32 0.0, %v131_v22 }
  0xf0   :  { %v153_v25 = vmul.f32 1.442695, %v150_v23 }
  0xf1   :  { %v151_v26 = vmul.f32 1.442695, %v149_v24 }
  0xf2   :  { %344 = vpow2.f32 %v153_v25 }
  0xf3   :  { %346 = vpow2.f32 %v151_v26 }
  0xfc   :  { %v345_v27 = vpop.eup %344 }
  0xfd   :  { %v347_v28 = vpop.eup %346  ;;  %v156_v29 = vadd.f32 1.0, %v345_v27 }
  0xfe   :  { %v155_v30 = vadd.f32 1.0, %v347_v28 }
  0xff   :  { %348 = vrcp.f32 %v156_v29 }
 0x100   :  { %350 = vrcp.f32 %v155_v30 }
 0x101   :  { %352 = vpow2.f32 %v143_v45 }
 0x102   :  { %354 = vpow2.f32 %v141_v46 }
 0x109   :  { %v349_v31 = vpop.eup %348 }
 0x10a   :  { %v351_v32 = vpop.eup %350  ;;  %v160_v33 = vmul.f32 %v349_v31, %v437_v3 }
 0x10b   :  { %v159_v34 = vmul.f32 %v351_v32, %v430_v2  ;;  %v353_v47 = vpop.eup %352 }
 0x10c   :  { %162 = vst.msk [vmem:[#allocation2 + $0x18] sm:$0xff] %vm25_vm0, %v160_v33  ;;  %v355_v48 = vpop.eup %354  ;;  %v146_v49 = vadd.f32 1.0, %v353_v47 }
 0x10d   :  { %161 = vst.msk [vmem:[#allocation2 + $0x10] sm:$0xff] %vm25_vm0, %v159_v34  ;;  %v145_v50 = vadd.f32 1.0, %v355_v48 }
 0x10e   :  { %356 = vrcp.f32 %v146_v49 }
 0x10f   :  { %358 = vrcp.f32 %v145_v50 }
 0x113   :  { %v168_v35 = vld [vmem:[#allocation2 + $0x18] sm:$0xff] }
 0x114   :  { %v167_v36 = vld [vmem:[#allocation2 + $0x10] sm:$0xff] }
 0x115   :  { %v337_v37 = vpack.c.bf16 %v168_v35, %v167_v36 }
 0x117   :  { %338 = vmatprep.subr.bf16.mxu1 %v337_v37 }
 0x118   :  { %340 = vmatpush3.bf16.msra.mxu1 %v337_v37  ;;  %v357_v57 = vpop.eup %356 }
 0x119   :  { %v359_v58 = vpop.eup %358  ;;  %v255_v59 = vsub.f32 1.0, %v357_v57 }
 0x11a   :  { %v254_v60 = vsub.f32 1.0, %v359_v58 }
 0x11b   :  { %323 = vmatmul.mubr.msk.f32.vlgmr.msra.gmra.mrb[0].mxu1 %vm25_vm0, %v164_v38  ;;  %v257_v0 = vmul.f32 %v255_v59, %v437_v3 }
 0x11c   :  { %v256_v4 = vmul.f32 %v254_v60, %v430_v2 }
 0x1ee   :  { %v324_v53 = vpop.f32.mrb[0].mxu1 }
 0x1ef   :  { %v249_v54 = vadd.f32 %v324_v53, %v170_v51  ;;  %v243_v55 = vpop.f32.mrb[1].mxu1 }
 0x1f0   :  { %v244_v56 = vadd.f32 %v243_v55, %v169_v52 }
 0x1f1   :  { %360 = vtanh.f32 %v249_v54 }
 0x1f2   :  { %362 = vtanh.f32 %v244_v56 }
 0x1fb   :  { %v361_v61 = vpop.eup %360 }
 0x1fc   :  { %v363_v62 = vpop.eup %362  ;;  %v259_v63 = vmul.f32 %v361_v61, %v357_v57 }
 0x1fd   :  { %v258_v1 = vmul.f32 %v363_v62, %v359_v58 }
 0x1fe   :  { %v261_v5 = vadd.f32 %v259_v63, %v257_v0 }
 0x1ff   :  { %v260_v6 = vadd.f32 %v258_v1, %v256_v4 }
 0x200   :  { %263 = vst.msk [vmem:[#allocation3 + $0x8] sm:$0xff] %vm25_vm0, %v261_v5 }
 0x201   :  { %262 = vst.msk [vmem:[#allocation3] sm:$0xff] %vm25_vm0, %v260_v6 }
 0x202   :  { %375 = shalt.err (!%p372_p4)
}
 0x203   :  { %s376_s25 = scalar_lea.hbm %s510_s5, 256 }
 0x204   :  { %p377_p5 = scmp.ne.s32.totalorder %s510_s5, %s376_s25  ;;  %p380_p6 = scmp.lt.u32.totalorder %s376_s25, %s510_s5 }
 0x206   :  { %p382_p7 = pnand %p380_p6, %p377_p5 }
 0x208   :  { %385 = shalt.err (!%p382_p7)
}
 0x209   :  { %s389_s28 = smov 128   ;;  %s390_s29 = smov 8  }
 0x20a   :  { %275 = dma.vmem_to_hbm [thread:$0]  %s270_s22, 256, %s510_s5, [#allocation4], %s389_s28, %s389_s28, %s390_s29  }
 0x20b   :  { %386 = dma.done.wait [#allocation4], 256  }
 0x20c   :  { %387 = vsyncadd [#allocation4], 4294967040 }
 0x20d   :  { %279 = vsyncpa [#allocation4], 1 }

</bundles_post_ra>
